<compile_context>
chip_gen: v6e
topology: v6e:2x2x1
jax: 0.10.0
libtpu: 0.0.40
codegen_flags: <defaults>
</compile_context>

<pallas_src>
import jax
import jax.numpy as jnp
from jax.experimental import pallas as pl
from jax.experimental.pallas import tpu as pltpu

LANE = 128               # vreg lane width
TM_MAX = 4096            # max rows (of 128 lanes) per block: 4096*128*4B = 2 MiB
TARGET_BLOCKS = 4        # keep >= 4 grid blocks so v7x's 2 TCs both get work
SMALL_N = 65536          # below this, plain JAX beats any kernel launch


def _round_up(a, m):
    return ((a + m - 1) // m) * m


def linear_kernel(x_ref, w_ref, b_ref, o_ref):
    # x_ref/o_ref: (tm, 128) VMEM tiles; w_ref/b_ref: (1,) f32 scalars in SMEM.
    # Pure VPU fused multiply-add with scalar broadcast (no MXU involvement).
    o_ref[...] = (x_ref[...] * w_ref[0] + b_ref[0]).astype(o_ref.dtype)


def linear_forward(x, weight, bias):
    """x: (N, 1), weight: (1, 1), bias: (1,) -> (N, 1). Same as nn.Linear(1, 1)."""
    n, in_f = x.shape
    out_f = weight.shape[0]
    assert in_f == 1 and out_f == 1, "LinearRegressionModel is nn.Linear(1, 1)"

    # ---- tiny-batch fast path: a single fused XLA elementwise op ------------
    if n < SMALL_N:
        return (x * weight[0, 0] + bias[0]).astype(x.dtype)

    # ---- lane-dense slab view ------------------------------------------------
    x_flat = x.reshape(n)                      # free (bitcast) reshape
    pad = (-n) % LANE
    if pad:                                    # ragged tail: pad to 128 only
        x_flat = jnp.pad(x_flat, (0, pad))
    rows = (n + pad) // LANE
    x_slab = x_flat.reshape(rows, LANE)        # free reshape

    # Row-tile size: as large as possible (kernel is HBM-bandwidth bound), but
    # keep >= TARGET_BLOCKS grid blocks for v7x megacore and stay within v5e's
    # 16 MiB default scoped VMEM (2 MiB block x 2 buffers x in/out = 8 MiB).
    tm = min(TM_MAX, max(8, _round_up(pl.cdiv(rows, TARGET_BLOCKS), 8)))
    grid = (pl.cdiv(rows, tm),)                # partial last block is masked

    w_s = weight.reshape(1).astype(jnp.float32)   # SMEM scalar
    b_s = bias.reshape(1).astype(jnp.float32)     # SMEM scalar

    y_slab = pl.pallas_call(
        linear_kernel,
        out_shape=jax.ShapeDtypeStruct((rows, LANE), x.dtype),
        grid_spec=pltpu.PrefetchScalarGridSpec(
            num_scalar_prefetch=0,
            grid=grid,
            in_specs=[
                pl.BlockSpec((tm, LANE), lambda i: (i, 0)),
                pl.BlockSpec(memory_space=pltpu.MemorySpace.SMEM),
                pl.BlockSpec(memory_space=pltpu.MemorySpace.SMEM),
            ],
            out_specs=pl.BlockSpec((tm, LANE), lambda i: (i, 0)),
        ),
        compiler_params=pltpu.CompilerParams(
            # Independent batch row-tiles -> shard across TCs on v7x.
            dimension_semantics=("parallel",),
        ),
    )(x_slab, w_s, b_s)

    y_flat = y_slab.reshape(rows * LANE)       # free reshape
    if pad:
        y_flat = y_flat[:n]
    return y_flat.reshape(n, out_f)


if __name__ == "__main__":
    key = jax.random.PRNGKey(0)
    kx, kw, kb = jax.random.split(key, 3)

    # Parameters shaped like nn.Linear(1, 1) (fan_in = 1).
    weight = jax.random.uniform(kw, (1, 1), jnp.float32, minval=-1.0, maxval=1.0)
    bias = jax.random.uniform(kb, (1,), jnp.float32, minval=-1.0, maxval=1.0)

    def ref(xv):
        return xv @ weight.T + bias

    # Module-sized example: (8, 1) -> small-batch fast path.
    x_small = jax.random.normal(kx, (8, 1), jnp.float32)
    y_small = jax.block_until_ready(linear_forward(x_small, weight, bias))
    assert y_small.shape == (8, 1)
    assert jnp.allclose(y_small, ref(x_small), atol=1e-5)

    # Kernel path, N a multiple of 128 (zero-copy wrapper, exact grid of 4).
    x_aligned = jax.random.normal(kx, (131072, 1), jnp.float32)
    y_aligned = jax.block_until_ready(linear_forward(x_aligned, weight, bias))
    assert jnp.allclose(y_aligned, ref(x_aligned), atol=1e-5)

    # Kernel path, ragged N (pad to next 128 + masked partial last row block).
    x_ragged = jax.random.normal(kx, (70000, 1), jnp.float32)
    y_ragged = jax.block_until_ready(linear_forward(x_ragged, weight, bias))
    assert jnp.allclose(y_ragged, ref(x_ragged), atol=1e-5)

    # Kernel path, large N hitting the 2 MiB max block size with a ragged tail.
    x_big = jax.random.normal(kx, (2_097_152 + 75, 1), jnp.float32)
    y_big = jax.block_until_ready(linear_forward(x_big, weight, bias))
    assert jnp.allclose(y_big, ref(x_big), atol=1e-5)

    print("KERNEL_OK")
</pallas_src>

<mosaic_0001>
module attributes {stable_mosaic.version = 11 : i64} {
  func.func @linear_kernel(%arg0: i32, %arg1: memref<256x128xf32, #tpu.memory_space<vmem>>, %arg2: memref<1xf32, #tpu.memory_space<smem>>, %arg3: memref<1xf32, #tpu.memory_space<smem>>, %arg4: memref<256x128xf32, #tpu.memory_space<vmem>>) attributes {dimension_semantics = [#tpu.dimension_semantics<parallel>], iteration_bounds = array<i64: 4>, scalar_prefetch = 0 : i64, scratch_operands = 0 : i64, tpu.core_type = #tpu.core_type<tc>, window_params = [{transform_indices = @transform_0, window_bounds = array<i64: 256, 128>}, {transform_indices = @transform_1, window_bounds = array<i64: 1>}, {transform_indices = @transform_2, window_bounds = array<i64: 1>}, {transform_indices = @transform_3, window_bounds = array<i64: 256, 128>}]} {
    %c0 = arith.constant 0 : index
    %c0_0 = arith.constant 0 : index
    %0 = vector.load %arg1[%c0, %c0_0] : memref<256x128xf32, #tpu.memory_space<vmem>>, vector<256x128xf32>
    %c0_1 = arith.constant 0 : index
    %1 = memref.load %arg2[%c0_1] : memref<1xf32, #tpu.memory_space<smem>>
    %2 = vector.broadcast %1 : f32 to vector<256x128xf32>
    %3 = arith.mulf %0, %2 : vector<256x128xf32>
    %c0_2 = arith.constant 0 : index
    %4 = memref.load %arg3[%c0_2] : memref<1xf32, #tpu.memory_space<smem>>
    %5 = vector.broadcast %4 : f32 to vector<256x128xf32>
    %6 = arith.addf %3, %5 : vector<256x128xf32>
    %c0_3 = arith.constant 0 : index
    %c0_4 = arith.constant 0 : index
    %7 = vector.load %arg4[%c0_3, %c0_4] : memref<256x128xf32, #tpu.memory_space<vmem>>, vector<256x128xf32>
    tpu.vector_store %arg4[%c0_3, %c0_4], %6 {strides = array<i32>} : memref<256x128xf32, #tpu.memory_space<vmem>>, vector<256x128xf32>,
    return
  }
  func.func @transform_0(%arg0: i32) -> (i32, i32) {
    %c0_i32 = arith.constant 0 : i32
    %c0_i32_0 = arith.constant 0 : i32
    return %arg0, %c0_i32 : i32, i32
  }
  func.func @transform_1(%arg0: i32) -> i32 {
    %c0_i32 = arith.constant 0 : i32
    %c0_i32_0 = arith.constant 0 : i32
    return %c0_i32 : i32
  }
  func.func @transform_2(%arg0: i32) -> i32 {
    %c0_i32 = arith.constant 0 : i32
    %c0_i32_0 = arith.constant 0 : i32
    return %c0_i32 : i32
  }
  func.func @transform_3(%arg0: i32) -> (i32, i32) {
    %c0_i32 = arith.constant 0 : i32
    %c0_i32_0 = arith.constant 0 : i32
    return %arg0, %c0_i32 : i32, i32
  }
}

</mosaic_0001>

<bundles_post_ra>
// kernel: tpu_custom_call.1
= control target key start
LH: loop header
LB: loop body
LE: loop exit
PB: predicated region body
PF: predicated region fallthrough
CT: control target
= control target key end

     0   :  { %s897_s0 = inlined_call_operand.hbm [shape: f32[1024,128], index: 0, kind: input, shape index: {}]   ;;  %s898_s1 = inlined_call_operand.<no memory space> [shape: f32[1], index: 1, kind: input, shape index: {}]   ;;  %s899_s2 = inlined_call_operand.<no memory space> [shape: f32[1], index: 2, kind: input, shape index: {}]   ;;  %s900_s3 = inlined_call_operand.hbm [shape: f32[1024,128], index: 3, kind: output, shape index: {}]  }
   0x1   :  { %8 = sst [smem:[#allocation2]] %s898_s1 }
   0x2   :  { %9 = sst [smem:[#allocation3]] %s899_s2 }
   0x3   :  { %10 = vsyncpa [#allocation5], 0 }
   0x4   :  { %12 = vsyncpa [#allocation5 + $0x1], 0 }
   0x5   :  { %13 = vsyncpa [#allocation6], 0 }
   0x6   :  { %15 = vsyncpa [#allocation6 + $0x1], 0  ;;  %s604_s16 = smov 0   ;;  %s606_s17 = smov 0  }
   0x7   :  { %s608_s18 = smov 0   ;;  %s610_s19 = smov 0  }
   0x8 LB: > { %s625_s1 = sadd.s32 4294967295, %s570_s19   ;;  %s412_s2 = sadd.s32 4294967294, %s570_s19   ;;  %s570_s19 = sphi %s610_s19, %s914_s19   ;;  %s566_s18 = sphi %s608_s18, %s913_s18   ;;  %s562_s17 = sphi %s606_s17, %s912_s17   ;;  %s558_s16 = sphi %s604_s16, %s911_s16  }
   0x9   : > { %s629_s20 = sadd.s32 1, %s570_s19   ;;  %s28_s21 = sadd.s32 1, %s566_s18 }
   0xa   : > { %s25_s22 = ssub.s32 %s570_s19, %s629_s20  ;;  %p35_p0 = scmp.ne.s32.totalorder %s566_s18, %s562_s17 }
   0xb   : > { %p26_p1 = scmp.eq.s32.totalorder %s25_s22, 0  ;;  %p36_p2 = scmp.eq.s32.totalorder %s570_s19, 0 }
   0xc   : > { %p41_p3 = scmp.ne.s32.totalorder %s562_s17, %s558_s16  ;;  %p42_p4 = scmp.eq.s32.totalorder %s625_s1, 0 }
   0xd   : > { %s641_s23 = scalar_select %p26_p1, %s566_s18, %s28_s21  }
   0xe   : > { %p643_p5 = por %p36_p2, %p35_p0  ;;  %p647_p6 = por %p42_p4, %p41_p3 }
   0xf   : > { %p107_p7 = scmp.eq.s32.totalorder %s625_s1, 3  ;;  %p113_p8 = scmp.eq.s32.totalorder %s412_s2, 3 }
  0x10   : > { %s904_s25 = scalar_select %p647_p6, 1, 0 }
  0x11   : > { %p440_p9 = scmp.lt.s32.totalorder %s570_s19, 4  ;;  %p653_p10 = por %p107_p7, %p35_p0 }
  0x12   : > { %p657_p11 = por %p113_p8, %p41_p3  ;;  %s139_s28 = sand.u32 1, %s566_s18  }
  0x13   : > { %s905_s26 = scalar_select %p653_p10, 1, 0 }
  0x14   : > { %s906_s27 = scalar_select %p657_p11, 1, 0 }
  0x15   : > { %s426_s29 = sshll.u32 %s570_s19, 12  ;;  %s415_s30 = sshll.u32 %s139_s28, 8 }
  0x16   : > { %s666_s6 = scalar_lea.hbm %s897_s0, %s426_s29  ;;  %s143_s7 = scalar_lea.vmem [#allocation4], %s415_s30 }
  0x17   : > { %s150_s8 = sshll.u32 %s143_s7, 4  ;;  %p670_p12 = pnand %p440_p9, %p643_p5  ;;  %s674_s8 = int_to_ptr.vmem [resolvable:$true] %s150_s8 }
  0x18   : > { %s676_s10 = scalar_lea.sflag [#allocation5], %s139_s28  ;;  %s478_s11 = scalar_lea.hbm %s666_s6, 4096 }
  0x19   : > { %p479_p13 = scmp.ne.s32.totalorder %s666_s6, %s478_s11  ;;  %p480_p0 = pneg %p670_p12 }
  0x1a   : > { %s483_s14 = scalar_lea.hbm %s897_s0, 16384  ;;  %p484_p3 = scmp.lt.s32.totalorder %s666_s6, %s897_s0 }
  0x1b   : > { %p481_p1 = pnand %p480_p0, %p479_p13  ;;  %p485_p4 = scmp.lt.s32.totalorder %s483_s14, %s478_s11 }
  0x1d   : > { %p482_p2 = pneg %p481_p1  ;;  %p486_p5 = por %p485_p4, %p484_p3 }
  0x1f   : > { %p487_p7 = pnand %p486_p5, %p482_p2 }
  0x21   : > { %490 = shalt.err (!%p487_p7)
}
  0x22   : > { %s491_s21 = scalar_lea.vmem %s674_s8, 4096  ;;  %s572_s22 = smov [#allocation4]  }
  0x23   : > { %p492_p8 = scmp.ne.s32.totalorder %s674_s8, %s491_s21  ;;  %s496_s24 = sshll.u32 %s572_s22, 4  ;;  %s497_s24 = int_to_ptr.vmem [resolvable:$false] %s496_s24 }
  0x24   : > { %s498_s28 = scalar_lea.vmem %s497_s24, 8192  ;;  %p499_p1 = scmp.lt.s32.totalorder %s674_s8, %s497_s24 }
  0x25   : > { %p494_p9 = pnand %p492_p8, %p480_p0  ;;  %p500_p11 = scmp.lt.s32.totalorder %s498_s28, %s491_s21 }
  0x27   : > { %p495_p13 = pneg %p494_p9  ;;  %p501_p10 = por %p500_p11, %p499_p1 }
  0x29   : > { %p502_p6 = pnand %p501_p10, %p495_p13 }
  0x2b   : > { %505 = shalt.err (!%p502_p6)
}
  0x2c   : > { %s573_s29 = smov 128   ;;  %s574_s30 = smov 8  }
  0x2d   : > { %435 = dma.hbm_to_vmem [thread:$0]  (!%p670_p12), %s666_s6, 4096, %s674_s8, %s676_s10, %s573_s29, %s573_s29, %s574_s30  }
  0x2e   : > { %p418_p0 = scmp.ge.s32.totalorder %s570_s19, 1  ;;  %p158_p2 = scmp.lt.s32.totalorder %s570_s19, 5 }
  0x30   : > { %p159_p3 = pnand %p418_p0, %p158_p2 }
  0x31   : > { %s700_s4 = sand.u32 (!%p159_p3), 1, %s562_s17   ;;  %p908_p6 = scmp.ne.s32.totalorder (!%p159_p3), %s904_s25, 0 }
  0x32   : > { %162 = sbr.rel (%p159_p3) target bundleno = 98 (0x62), region = 32  ;;  %s419_s5 = sshll.u32 (!%p159_p3), %s700_s4, 8 }
  0x33   : > { %s165_s7 = scalar_lea.sflag (!%p159_p3), [#allocation5], %s700_s4  ;;  %s706_s11 = scalar_lea.vmem (!%p159_p3), [#allocation4], %s419_s5 }
  0x37   : > { %549 = dma.done.wait (%p908_p6), %s165_s7, 4096  }
  0x38   : > { %551 = vsyncadd (%p908_p6), %s165_s7, 4294963200  ;;  %s225_s6 = sld [smem:[#allocation2]]  ;;  %v193_v0 = vld [vmem:[%s706_s11] sm:$0xff]  ;;  %v194_v2 = vld [vmem:[%s706_s11 + $0x8] sm:$0xff]  ;;  %s747_s25 = scalar_lea.vmem [#allocation7], %s419_s5 }
  0x39   : > { %s259_s8 = sld [smem:[#allocation3]]  ;;  %v195_v3 = vld [vmem:[%s706_s11 + $0x10] sm:$0xff]  ;;  %v196_v8 = vld [vmem:[%s706_s11 + $0x18] sm:$0xff]  ;;  %v197_v9 = vld [vmem:[%s706_s11 + $0x20] sm:$0xff]  ;;  %s427_s9 = sshll.u32 %s625_s1, 12 }
  0x3a   : > { %v198_v10 = vld [vmem:[%s706_s11 + $0x28] sm:$0xff]  ;;  %v199_v14 = vld [vmem:[%s706_s11 + $0x30] sm:$0xff]  ;;  %v200_v15 = vld [vmem:[%s706_s11 + $0x38] sm:$0xff]  ;;  %s339_s10 = sshll.u32 %s747_s25, 4  ;;  %s847_s13 = scalar_lea.hbm %s900_s3, %s427_s9  ;;  %s853_s10 = int_to_ptr.vmem [resolvable:$true] %s339_s10 }
  0x3b   : > { %v201_v16 = vld [vmem:[%s706_s11 + $0x40] sm:$0xff]  ;;  %v202_v21 = vld [vmem:[%s706_s11 + $0x48] sm:$0xff]  ;;  %v203_v22 = vld [vmem:[%s706_s11 + $0x50] sm:$0xff]  ;;  %s326_s14 = scalar_lea.sflag [#allocation6], %s700_s4  ;;  %s506_s15 = scalar_lea.vmem %s853_s10, 4096 }
  0x3c   : > { %v204_v23 = vld [vmem:[%s706_s11 + $0x58] sm:$0xff]  ;;  %v205_v28 = vld [vmem:[%s706_s11 + $0x60] sm:$0xff]  ;;  %v206_v29 = vld [vmem:[%s706_s11 + $0x68] sm:$0xff]  ;;  %p507_p10 = scmp.ne.s32.totalorder %s853_s10, %s506_s15  ;;  %p909_p11 = scmp.ne.s32.totalorder %s905_s26, 0 }
  0x3d   : > { %v207_v30 = vld [vmem:[%s706_s11 + $0x70] sm:$0xff]  ;;  %v208_v35 = vld [vmem:[%s706_s11 + $0x78] sm:$0xff]  ;;  %v209_v40 = vld [vmem:[%s706_s11 + $0x80] sm:$0xff]  ;;  %s575_s2 = smov [#allocation7]  }
  0x3e   : > { %v713_v1 = vstv %s225_s6  ;;  %v210_v41 = vld [vmem:[%s706_s11 + $0x88] sm:$0xff]  ;;  %v211_v42 = vld [vmem:[%s706_s11 + $0x90] sm:$0xff]  ;;  %v212_v47 = vld [vmem:[%s706_s11 + $0x98] sm:$0xff]  ;;  %p508_p12 = pnand %p507_p10, %p909_p11  ;;  %s510_s21 = sshll.u32 %s575_s2, 4  ;;  %s511_s21 = int_to_ptr.vmem [resolvable:$false] %s510_s21 }
  0x3f   : > { %v227_v4 = vmul.f32 %v713_v1, %v193_v0  ;;  %v718_v5 = vstv %s259_s8  ;;  %v228_v6 = vmul.f32 %v713_v1, %v194_v2  ;;  %v229_v7 = vmul.f32 %v713_v1, %v195_v3  ;;  %v213_v48 = vld [vmem:[%s706_s11 + $0xa0] sm:$0xff]  ;;  %v214_v49 = vld [vmem:[%s706_s11 + $0xa8] sm:$0xff]  ;;  %v215_v54 = vld [vmem:[%s706_s11 + $0xb0] sm:$0xff]  ;;  %s512_s22 = scalar_lea.vmem %s511_s21, 8192  ;;  %p513_p5 = scmp.lt.s32.totalorder %s853_s10, %s511_s21 }
  0x40   : > { %v230_v11 = vmul.f32 %v713_v1, %v196_v8  ;;  %v231_v12 = vmul.f32 %v713_v1, %v197_v9  ;;  %v232_v13 = vmul.f32 %v713_v1, %v198_v10  ;;  %v233_v20 = vmul.f32 %v713_v1, %v199_v14  ;;  %v216_v59 = vld [vmem:[%s706_s11 + $0xb8] sm:$0xff]  ;;  %v217_v0 = vld [vmem:[%s706_s11 + $0xc0] sm:$0xff]  ;;  %v218_v2 = vld [vmem:[%s706_s11 + $0xc8] sm:$0xff]  ;;  %p509_p4 = pneg %p508_p12  ;;  %p514_p7 = scmp.lt.s32.totalorder %s512_s22, %s506_s15 }
  0x41   : > { %v261_v17 = vadd.f32 %v718_v5, %v227_v4  ;;  %v262_v18 = vadd.f32 %v718_v5, %v228_v6  ;;  %v263_v19 = vadd.f32 %v718_v5, %v229_v7  ;;  %v234_v27 = vmul.f32 %v713_v1, %v200_v15  ;;  %v219_v3 = vld [vmem:[%s706_s11 + $0xd0] sm:$0xff]  ;;  %v220_v9 = vld [vmem:[%s706_s11 + $0xd8] sm:$0xff]  ;;  %v221_v10 = vld [vmem:[%s706_s11 + $0xe0] sm:$0xff] }
  0x42   : > { %v264_v24 = vadd.f32 %v718_v5, %v230_v11  ;;  %v265_v25 = vadd.f32 %v718_v5, %v231_v12  ;;  %v266_v26 = vadd.f32 %v718_v5, %v232_v13  ;;  %v267_v31 = vadd.f32 %v718_v5, %v233_v20  ;;  %v222_v11 = vld [vmem:[%s706_s11 + $0xe8] sm:$0xff]  ;;  %p515_p8 = por %p514_p7, %p513_p5 }
  0x43   : > { %293 = vst [vmem:[%s747_s25] sm:$0xff] %v261_v17  ;;  %294 = vst [vmem:[%s747_s25 + $0x8] sm:$0xff] %v262_v18  ;;  %v235_v32 = vmul.f32 %v713_v1, %v201_v16  ;;  %v236_v33 = vmul.f32 %v713_v1, %v202_v21  ;;  %v237_v34 = vmul.f32 %v713_v1, %v203_v22  ;;  %v223_v16 = vld [vmem:[%s706_s11 + $0xf0] sm:$0xff]  ;;  %v224_v21 = vld [vmem:[%s706_s11 + $0xf8] sm:$0xff] }
  0x44   : > { %295 = vst [vmem:[%s747_s25 + $0x10] sm:$0xff] %v263_v19  ;;  %296 = vst [vmem:[%s747_s25 + $0x18] sm:$0xff] %v264_v24  ;;  %v268_v36 = vadd.f32 %v718_v5, %v234_v27  ;;  %v238_v37 = vmul.f32 %v713_v1, %v204_v23  ;;  %v239_v38 = vmul.f32 %v713_v1, %v205_v28  ;;  %p516_p9 = pnand %p515_p8, %p509_p4 }
  0x45   : > { %297 = vst [vmem:[%s747_s25 + $0x20] sm:$0xff] %v265_v25  ;;  %298 = vst [vmem:[%s747_s25 + $0x28] sm:$0xff] %v266_v26  ;;  %v240_v39 = vmul.f32 %v713_v1, %v206_v29  ;;  %v269_v43 = vadd.f32 %v718_v5, %v235_v32  ;;  %v270_v44 = vadd.f32 %v718_v5, %v236_v33 }
  0x46   : > { %299 = vst [vmem:[%s747_s25 + $0x30] sm:$0xff] %v267_v31  ;;  %v271_v45 = vadd.f32 %v718_v5, %v237_v34  ;;  %v241_v46 = vmul.f32 %v713_v1, %v207_v30  ;;  %300 = vst [vmem:[%s747_s25 + $0x38] sm:$0xff] %v268_v36  ;;  %v272_v50 = vadd.f32 %v718_v5, %v238_v37 }
  0x47   : > { %v273_v51 = vadd.f32 %v718_v5, %v239_v38  ;;  %v274_v52 = vadd.f32 %v718_v5, %v240_v39  ;;  %v242_v53 = vmul.f32 %v713_v1, %v208_v35  ;;  %301 = vst [vmem:[%s747_s25 + $0x40] sm:$0xff] %v269_v43  ;;  %302 = vst [vmem:[%s747_s25 + $0x48] sm:$0xff] %v270_v44 }
  0x48   : > { %303 = vst [vmem:[%s747_s25 + $0x50] sm:$0xff] %v271_v45  ;;  %v275_v55 = vadd.f32 %v718_v5, %v241_v46  ;;  %v243_v56 = vmul.f32 %v713_v1, %v209_v40  ;;  %v244_v57 = vmul.f32 %v713_v1, %v210_v41  ;;  %v245_v58 = vmul.f32 %v713_v1, %v211_v42 }
  0x49   : > { %304 = vst [vmem:[%s747_s25 + $0x58] sm:$0xff] %v272_v50  ;;  %305 = vst [vmem:[%s747_s25 + $0x60] sm:$0xff] %v273_v51  ;;  %v276_v60 = vadd.f32 %v718_v5, %v242_v53  ;;  %v246_v61 = vmul.f32 %v713_v1, %v212_v47  ;;  %v247_v62 = vmul.f32 %v713_v1, %v213_v48 }
  0x4a   : > { %306 = vst [vmem:[%s747_s25 + $0x68] sm:$0xff] %v274_v52  ;;  %v248_v63 = vmul.f32 %v713_v1, %v214_v49  ;;  %307 = vst [vmem:[%s747_s25 + $0x70] sm:$0xff] %v275_v55  ;;  %v277_v4 = vadd.f32 %v718_v5, %v243_v56  ;;  %v278_v6 = vadd.f32 %v718_v5, %v244_v57 }
  0x4b   : > { %v279_v7 = vadd.f32 %v718_v5, %v245_v58  ;;  %v249_v8 = vmul.f32 %v713_v1, %v215_v54  ;;  %308 = vst [vmem:[%s747_s25 + $0x78] sm:$0xff] %v276_v60  ;;  %v280_v12 = vadd.f32 %v718_v5, %v246_v61  ;;  %v281_v13 = vadd.f32 %v718_v5, %v247_v62 }
  0x4c   : > { %v282_v14 = vadd.f32 %v718_v5, %v248_v63  ;;  %v250_v15 = vmul.f32 %v713_v1, %v216_v59  ;;  %309 = vst [vmem:[%s747_s25 + $0x80] sm:$0xff] %v277_v4  ;;  %310 = vst [vmem:[%s747_s25 + $0x88] sm:$0xff] %v278_v6  ;;  %v251_v18 = vmul.f32 %v713_v1, %v217_v0 }
  0x4d   : > { %311 = vst [vmem:[%s747_s25 + $0x90] sm:$0xff] %v279_v7  ;;  %v283_v17 = vadd.f32 %v718_v5, %v249_v8  ;;  %v252_v19 = vmul.f32 %v713_v1, %v218_v2  ;;  %v253_v20 = vmul.f32 %v713_v1, %v219_v3  ;;  %312 = vst [vmem:[%s747_s25 + $0x98] sm:$0xff] %v280_v12 }
  0x4e   : > { %313 = vst [vmem:[%s747_s25 + $0xa0] sm:$0xff] %v281_v13  ;;  %314 = vst [vmem:[%s747_s25 + $0xa8] sm:$0xff] %v282_v14  ;;  %v284_v22 = vadd.f32 %v718_v5, %v250_v15  ;;  %v254_v23 = vmul.f32 %v713_v1, %v220_v9  ;;  %v255_v24 = vmul.f32 %v713_v1, %v221_v10 }
  0x4f   : > { %v256_v25 = vmul.f32 %v713_v1, %v222_v11  ;;  %315 = vst [vmem:[%s747_s25 + $0xb0] sm:$0xff] %v283_v17  ;;  %v285_v26 = vadd.f32 %v718_v5, %v251_v18  ;;  %v286_v27 = vadd.f32 %v718_v5, %v252_v19  ;;  %v287_v28 = vadd.f32 %v718_v5, %v253_v20 }
  0x50   : > { %v257_v29 = vmul.f32 %v713_v1, %v223_v16  ;;  %316 = vst [vmem:[%s747_s25 + $0xb8] sm:$0xff] %v284_v22  ;;  %v288_v30 = vadd.f32 %v718_v5, %v254_v23  ;;  %v289_v31 = vadd.f32 %v718_v5, %v255_v24  ;;  %v258_v33 = vmul.f32 %v713_v1, %v224_v21 }
  0x51   : > { %v290_v32 = vadd.f32 %v718_v5, %v256_v25  ;;  %317 = vst [vmem:[%s747_s25 + $0xc0] sm:$0xff] %v285_v26  ;;  %318 = vst [vmem:[%s747_s25 + $0xc8] sm:$0xff] %v286_v27 }
  0x52   : > { %319 = vst [vmem:[%s747_s25 + $0xd0] sm:$0xff] %v287_v28  ;;  %v291_v34 = vadd.f32 %v718_v5, %v257_v29  ;;  %320 = vst [vmem:[%s747_s25 + $0xd8] sm:$0xff] %v288_v30  ;;  %v292_v35 = vadd.f32 %v718_v5, %v258_v33 }
  0x53   : > { %321 = vst [vmem:[%s747_s25 + $0xe0] sm:$0xff] %v289_v31  ;;  %322 = vst [vmem:[%s747_s25 + $0xe8] sm:$0xff] %v290_v32 }
  0x54   : > { %323 = vst [vmem:[%s747_s25 + $0xf0] sm:$0xff] %v291_v34  ;;  %324 = vst [vmem:[%s747_s25 + $0xf8] sm:$0xff] %v292_v35 }
  0x55   : > { %519 = shalt.err (!%p516_p9)
}
  0x56   : > { %s520_s24 = scalar_lea.hbm %s847_s13, 4096  ;;  %s524_s30 = scalar_lea.hbm %s900_s3, 16384 }
  0x57   : > { %p521_p13 = scmp.ne.s32.totalorder %s847_s13, %s520_s24  ;;  %p525_p2 = scmp.lt.s32.totalorder %s847_s13, %s900_s3 }
  0x58   : > { %p526_p3 = scmp.lt.s32.totalorder %s524_s30, %s520_s24 }
  0x59   : > { %p522_p1 = pnand %p521_p13, %p909_p11 }
  0x5a   : > { %p527_p6 = por %p526_p3, %p525_p2 }
  0x5b   : > { %p523_p0 = pneg %p522_p1 }
  0x5d   : > { %p528_p10 = pnand %p527_p6, %p523_p0 }
  0x5f   : > { %531 = shalt.err (!%p528_p10)
}
  0x60   : > { %s576_s11 = smov 128   ;;  %s577_s6 = smov 8  }
  0x61   : > { %430 = dma.vmem_to_hbm [thread:$0]  (%p909_p11), %s853_s10, 4096, %s847_s13, %s326_s14, %s576_s11, %s576_s11, %s577_s6  }
  0x62 PF: > { %p441_p12 = scmp.ge.s32.totalorder %s570_s19, 2  ;;  %s354_s8 = sand.u32 1, %s558_s16  }
  0x63   : > { %p910_p4 = scmp.ne.s32.totalorder %s906_s27, 0  ;;  %s355_s25 = scalar_lea.sflag [#allocation6], %s354_s8 }
  0x65   : > { %p437_p5 = pnand %p441_p12, %p910_p4 }
  0x67   : > { %p438_p7 = pneg %p437_p5 }
  0x69   : > { %553 = dma.done.wait (%p438_p7), %s355_s25, 4096  }
  0x6a   : > { %555 = vsyncadd (%p438_p7), %s355_s25, 4294963200  ;;  %p18_p8 = scmp.ge.s32.totalorder %s629_s20, 6   ;;  %s911_s16 = smov %s562_s17 }
  0x6b   : > { %s912_s17 = smov %s566_s18  ;;  %s913_s18 = smov %s641_s23 }
  0x6c   : > { %s914_s19 = smov %s629_s20  ;;  %20 = sbr.rel (!%p18_p8) target bundleno = 8 (0x8), region = 77 }
  0x71   :  { %360 = vsyncpa [#allocation5], 1 }
  0x72   :  { %362 = vsyncpa [#allocation5 + $0x1], 1 }
  0x73   :  { %363 = vsyncpa [#allocation6], 1 }
  0x74   :  { %365 = vsyncpa [#allocation6 + $0x1], 1 }

</bundles_post_ra>
